<compile_context>
chip_gen: v6e
topology: v6e:2x2x1
jax: 0.10.0
libtpu: 0.0.40
codegen_flags: <defaults>
</compile_context>

<pallas_src>
import jax
import jax.numpy as jnp
import numpy as np
from jax.experimental import pallas as pl
from jax.experimental.pallas import tpu as pltpu


FC1_UNITS = 64
FC2_UNITS = 64
SUBLANE = 8


def _round_up(x, m):
    return (x + m - 1) // m * m


def _leaky_relu(x, negative_slope=0.01):
    # F.leaky_relu default negative_slope = 0.01
    return jnp.where(x >= 0, x, negative_slope * x)


def critic_d4pg_kernel(state_ref, act_ref,
                       w1_ref, b1_ref,
                       w2s_ref, w2a_ref, b2_ref,
                       w3_ref, b3_ref,
                       out_ref):
    cd = w1_ref.dtype  # MXU operand dtype (f32 or bf16); accumulation is f32.

    # fc1 + leaky_relu : [TB, S] @ [S, 64] -> [TB, 64] (f32 accumulator)
    xs = jnp.dot(state_ref[...], w1_ref[...],
                 preferred_element_type=jnp.float32) + b1_ref[...]
    xs = _leaky_relu(xs)

    # fc2 on torch.cat((xs, action), dim=1), expressed as two dots so the
    # action never needs lane padding: xs @ W2[:64] + action @ W2[64:64+A].
    h = (jnp.dot(xs.astype(cd), w2s_ref[...],
                 preferred_element_type=jnp.float32)
         + jnp.dot(act_ref[...], w2a_ref[...],
                   preferred_element_type=jnp.float32)
         + b2_ref[...])
    h = _leaky_relu(h)

    # fc3 (no activation), natural n_atoms-wide output.
    out = jnp.dot(h.astype(cd), w3_ref[...],
                  preferred_element_type=jnp.float32) + b3_ref[...]
    out_ref[...] = out.astype(out_ref.dtype)


def _xla_forward(state, action, p):
    """Plain fused-XLA path for small batches (launch overhead dominates)."""
    cd = p["w1"].dtype
    xs = _leaky_relu(jnp.dot(state.astype(cd), p["w1"],
                             preferred_element_type=jnp.float32) + p["b1"])
    h = _leaky_relu(jnp.dot(xs.astype(cd), p["w2_xs"],
                            preferred_element_type=jnp.float32)
                    + jnp.dot(action.astype(cd), p["w2_act"],
                              preferred_element_type=jnp.float32)
                    + p["b2"])
    out = jnp.dot(h.astype(cd), p["w3"],
                  preferred_element_type=jnp.float32) + p["b3"]
    return out.astype(jnp.float32)


def critic_d4pg_forward(state, action, p, *, tb=2048, min_pallas_batch=256):
    """CriticD4PG forward as a single batch-tiled Pallas kernel.

    `p` is the dict from prepare_params() (W2 pre-split, weights optionally
    bf16). On v7x prefer tb>=4096 so both TensorCores get >=4 grid steps.
    """
    B, S = state.shape
    A = action.shape[1]
    n_atoms = p["w3"].shape[1]

    if B < min_pallas_batch:
        return _xla_forward(state, action, p)

    # Only pad the batch up to the next sublane multiple when needed (rare,
    # <= 7 rows). No lane padding anywhere; no full-array pad copies.
    Bp = _round_up(B, SUBLANE)
    if Bp != B:
        state = jnp.pad(state, ((0, Bp - B), (0, 0)))
        action = jnp.pad(action, ((0, Bp - B), (0, 0)))

    tb = _round_up(max(SUBLANE, min(tb, Bp)), SUBLANE)
    grid = (pl.cdiv(Bp, tb),)

    def stream(feat):
        # batch-tiled stream: block index advances with the grid step
        return pl.BlockSpec((tb, feat), lambda i: (i, 0))

    def resident(arr):
        # same block every step -> fetched once, stays VMEM-resident
        return pl.BlockSpec(arr.shape, lambda i: (0, 0))

    weights = (p["w1"], p["b1"], p["w2_xs"], p["w2_act"], p["b2"],
               p["w3"], p["b3"])

    in_specs = [stream(S), stream(A)] + [resident(w) for w in weights]
    out_spec = pl.BlockSpec((tb, n_atoms), lambda i: (i, 0))

    flops = 2 * Bp * (S * FC1_UNITS + FC1_UNITS * FC2_UNITS
                      + A * FC2_UNITS + FC2_UNITS * n_atoms)
    bytes_accessed = (Bp * S * state.dtype.itemsize
                      + Bp * A * action.dtype.itemsize
                      + Bp * n_atoms * 4
                      + sum(int(w.size) * w.dtype.itemsize for w in weights))

    out = pl.pallas_call(
        critic_d4pg_kernel,
        out_shape=jax.ShapeDtypeStruct((Bp, n_atoms), jnp.float32),
        grid=grid,
        in_specs=in_specs,
        out_specs=out_spec,
        compiler_params=pltpu.CompilerParams(
            dimension_semantics=("parallel",)),
        cost_estimate=pl.CostEstimate(
            flops=int(flops), transcendentals=0,
            bytes_accessed=int(bytes_accessed)),
    )(state, action, *weights)

    return out if Bp == B else out[:B]


def prepare_params(params, compute_dtype=jnp.float32):
    """One-time re-packing, hoisted out of the per-call hot path.

    Splits W2 into its fc1-activation half and action half and (optionally)
    casts the weight matrices to the MXU compute dtype (bf16). Biases stay
    f32 and are added on the f32 accumulator inside the kernel.
    """
    w2 = params["w2"]
    return {
        "w1": params["w1"].astype(compute_dtype),
        "b1": params["b1"].astype(jnp.float32),
        "w2_xs": w2[:FC1_UNITS].astype(compute_dtype),
        "w2_act": w2[FC1_UNITS:].astype(compute_dtype),
        "b2": params["b2"].astype(jnp.float32),
        "w3": params["w3"].astype(compute_dtype),
        "b3": params["b3"].astype(jnp.float32),
    }


def init_params(key, state_size, action_size, n_atoms,
                fc1_units=FC1_UNITS, fc2_units=FC2_UNITS):
    """Deterministic synthetic init matching the PyTorch module's shapes.

    PyTorch: fc1.weight [fc1, state], fc2.weight [fc2, fc1+action],
             fc3.weight [n_atoms, fc2]. We store transposed ([in, out]).
    hidden_init uses weight.size()[0] (= out_features), matching the module.
    """
    k = jax.random.split(key, 6)
    lim1 = 1.0 / np.sqrt(fc1_units)
    lim2 = 1.0 / np.sqrt(fc2_units)
    w1 = jax.random.uniform(k[0], (state_size, fc1_units),
                            minval=-lim1, maxval=lim1, dtype=jnp.float32)
    b1 = jax.random.uniform(k[1], (1, fc1_units),
                            minval=-lim1, maxval=lim1, dtype=jnp.float32)
    w2 = jax.random.uniform(k[2], (fc1_units + action_size, fc2_units),
                            minval=-lim2, maxval=lim2, dtype=jnp.float32)
    b2 = jax.random.uniform(k[3], (1, fc2_units),
                            minval=-lim2, maxval=lim2, dtype=jnp.float32)
    w3 = jax.random.uniform(k[4], (fc2_units, n_atoms),
                            minval=-0.003, maxval=0.003, dtype=jnp.float32)
    b3 = jax.random.uniform(k[5], (1, n_atoms),
                            minval=-0.003, maxval=0.003, dtype=jnp.float32)
    return {"w1": w1, "b1": b1, "w2": w2, "b2": b2, "w3": w3, "b3": b3}


def reference_forward(state, action, params):
    """Pure-JAX reference for correctness checking (matches torch forward)."""
    xs = _leaky_relu(state @ params["w1"] + params["b1"])
    x = jnp.concatenate([xs, action], axis=1)
    h = _leaky_relu(x @ params["w2"] + params["b2"])
    return h @ params["w3"] + params["b3"]


if __name__ == "__main__":
    # Small shapes consistent with the module.
    batch = 2
    state_size = 24
    action_size = 4
    n_atoms = 51
    v_min, v_max = -10.0, 10.0  # supports buffer (unused in forward)

    key = jax.random.PRNGKey(0)
    kp, ks, ka, ks2, ka2 = jax.random.split(key, 5)
    params = init_params(kp, state_size, action_size, n_atoms)
    prepared = prepare_params(params)                      # one-time, f32

    state = jax.random.normal(ks, (batch, state_size), dtype=jnp.float32)
    action = jax.random.uniform(ka, (batch, action_size),
                                minval=-1.0, maxval=1.0, dtype=jnp.float32)

    # Small-shape check: force the Pallas path (min_pallas_batch=0) so the
    # kernel itself is exercised even at batch=2.
    out = critic_d4pg_forward(state, action, prepared, min_pallas_batch=0)
    out = jax.block_until_ready(out)
    ref = reference_forward(state, action, params)
    np.testing.assert_allclose(np.asarray(out), np.asarray(ref),
                               rtol=1e-5, atol=1e-5)

    # Multi-step grid with a partial tail block (1000 rows, tb=256 -> 4 steps,
    # last block covers only 232 valid rows and is masked on store).
    big_b = 1000
    state2 = jax.random.normal(ks2, (big_b, state_size), dtype=jnp.float32)
    action2 = jax.random.uniform(ka2, (big_b, action_size),
                                 minval=-1.0, maxval=1.0, dtype=jnp.float32)
    out2 = jax.block_until_ready(
        critic_d4pg_forward(state2, action2, prepared, tb=256,
                            min_pallas_batch=0))
    ref2 = reference_forward(state2, action2, params)
    np.testing.assert_allclose(np.asarray(out2), np.asarray(ref2),
                               rtol=1e-4, atol=1e-4)

    # bf16-weight / bf16-activation path: halves HBM input traffic; f32 MXU
    # accumulation, f32 elementwise / bias / output.
    prepared_bf16 = prepare_params(params, compute_dtype=jnp.bfloat16)
    out3 = jax.block_until_ready(
        critic_d4pg_forward(state2.astype(jnp.bfloat16),
                            action2.astype(jnp.bfloat16),
                            prepared_bf16, tb=256, min_pallas_batch=0))
    np.testing.assert_allclose(np.asarray(out3), np.asarray(ref2),
                               rtol=5e-2, atol=1e-2)

    # TODO(synk): distr_to_q (softmax * supports, sum) is a separate utility
    # method on the module, not part of forward(); not implemented as a kernel.
    print("KERNEL_OK")
</pallas_src>

<mosaic_0001>
module attributes {stable_mosaic.version = 11 : i64} {
  func.func @critic_d4pg_kernel(%arg0: i32, %arg1: memref<8x24xf32, #tpu.memory_space<vmem>>, %arg2: memref<8x4xf32, #tpu.memory_space<vmem>>, %arg3: memref<24x64xf32, #tpu.memory_space<vmem>>, %arg4: memref<1x64xf32, #tpu.memory_space<vmem>>, %arg5: memref<64x64xf32, #tpu.memory_space<vmem>>, %arg6: memref<4x64xf32, #tpu.memory_space<vmem>>, %arg7: memref<1x64xf32, #tpu.memory_space<vmem>>, %arg8: memref<64x51xf32, #tpu.memory_space<vmem>>, %arg9: memref<1x51xf32, #tpu.memory_space<vmem>>, %arg10: memref<8x51xf32, #tpu.memory_space<vmem>>) attributes {dimension_semantics = [#tpu.dimension_semantics<parallel>], iteration_bounds = array<i64: 1>, scalar_prefetch = 0 : i64, scratch_operands = 0 : i64, tpu.core_type = #tpu.core_type<tc>, window_params = [{transform_indices = @transform_0, window_bounds = array<i64: 8, 24>}, {transform_indices = @transform_1, window_bounds = array<i64: 8, 4>}, {pipeline_mode = #tpu.pipeline_mode<synchronous>, transform_indices = @transform_2, window_bounds = array<i64: 24, 64>}, {pipeline_mode = #tpu.pipeline_mode<synchronous>, transform_indices = @transform_3, window_bounds = array<i64: 1, 64>}, {pipeline_mode = #tpu.pipeline_mode<synchronous>, transform_indices = @transform_4, window_bounds = array<i64: 64, 64>}, {pipeline_mode = #tpu.pipeline_mode<synchronous>, transform_indices = @transform_5, window_bounds = array<i64: 4, 64>}, {pipeline_mode = #tpu.pipeline_mode<synchronous>, transform_indices = @transform_6, window_bounds = array<i64: 1, 64>}, {pipeline_mode = #tpu.pipeline_mode<synchronous>, transform_indices = @transform_7, window_bounds = array<i64: 64, 51>}, {pipeline_mode = #tpu.pipeline_mode<synchronous>, transform_indices = @transform_8, window_bounds = array<i64: 1, 51>}, {transform_indices = @transform_9, window_bounds = array<i64: 8, 51>}]} {
    %c0 = arith.constant 0 : index
    %c0_0 = arith.constant 0 : index
    %0 = vector.load %arg1[%c0, %c0_0] : memref<8x24xf32, #tpu.memory_space<vmem>>, vector<8x24xf32>
    %c0_1 = arith.constant 0 : index
    %c0_2 = arith.constant 0 : index
    %1 = vector.load %arg3[%c0_1, %c0_2] : memref<24x64xf32, #tpu.memory_space<vmem>>, vector<24x64xf32>
    %cst = arith.constant dense<0.000000e+00> : vector<8x64xf32>
    %2 = tpu.matmul %0, %1, %cst {dimension_numbers = #tpu.dot_dimension_numbers<[1], [0], [0], [1], [0, 0, 1, 1], [], []>} : vector<8x24xf32>, vector<24x64xf32>, vector<8x64xf32> -> vector<8x64xf32>
    %c0_3 = arith.constant 0 : index
    %c0_4 = arith.constant 0 : index
    %3 = vector.load %arg4[%c0_3, %c0_4] : memref<1x64xf32, #tpu.memory_space<vmem>>, vector<1x64xf32>
    %4 = vector.broadcast %3 : vector<1x64xf32> to vector<8x64xf32>
    %5 = arith.addf %2, %4 : vector<8x64xf32>
    %cst_5 = arith.constant 0.000000e+00 : f32
    %6 = vector.broadcast %cst_5 : f32 to vector<8x64xf32>
    %7 = arith.cmpf oge, %5, %6 : vector<8x64xf32>
    %cst_6 = arith.constant 0.00999999977 : f32
    %8 = vector.broadcast %cst_6 : f32 to vector<8x64xf32>
    %9 = arith.mulf %8, %5 : vector<8x64xf32>
    %10 = arith.select %7, %5, %9 : vector<8x64xi1>, vector<8x64xf32>
    %c0_7 = arith.constant 0 : index
    %c0_8 = arith.constant 0 : index
    %11 = vector.load %arg5[%c0_7, %c0_8] : memref<64x64xf32, #tpu.memory_space<vmem>>, vector<64x64xf32>
    %cst_9 = arith.constant dense<0.000000e+00> : vector<8x64xf32>
    %12 = tpu.matmul %10, %11, %cst_9 {dimension_numbers = #tpu.dot_dimension_numbers<[1], [0], [0], [1], [0, 0, 1, 1], [], []>} : vector<8x64xf32>, vector<64x64xf32>, vector<8x64xf32> -> vector<8x64xf32>
    %c0_10 = arith.constant 0 : index
    %c0_11 = arith.constant 0 : index
    %13 = vector.load %arg2[%c0_10, %c0_11] : memref<8x4xf32, #tpu.memory_space<vmem>>, vector<8x4xf32>
    %c0_12 = arith.constant 0 : index
    %c0_13 = arith.constant 0 : index
    %14 = vector.load %arg6[%c0_12, %c0_13] : memref<4x64xf32, #tpu.memory_space<vmem>>, vector<4x64xf32>
    %cst_14 = arith.constant dense<0.000000e+00> : vector<8x64xf32>
    %15 = tpu.matmul %13, %14, %cst_14 {dimension_numbers = #tpu.dot_dimension_numbers<[1], [0], [0], [1], [0, 0, 1, 1], [], []>} : vector<8x4xf32>, vector<4x64xf32>, vector<8x64xf32> -> vector<8x64xf32>
    %16 = arith.addf %12, %15 : vector<8x64xf32>
    %c0_15 = arith.constant 0 : index
    %c0_16 = arith.constant 0 : index
    %17 = vector.load %arg7[%c0_15, %c0_16] : memref<1x64xf32, #tpu.memory_space<vmem>>, vector<1x64xf32>
    %18 = vector.broadcast %17 : vector<1x64xf32> to vector<8x64xf32>
    %19 = arith.addf %16, %18 : vector<8x64xf32>
    %cst_17 = arith.constant 0.000000e+00 : f32
    %20 = vector.broadcast %cst_17 : f32 to vector<8x64xf32>
    %21 = arith.cmpf oge, %19, %20 : vector<8x64xf32>
    %cst_18 = arith.constant 0.00999999977 : f32
    %22 = vector.broadcast %cst_18 : f32 to vector<8x64xf32>
    %23 = arith.mulf %22, %19 : vector<8x64xf32>
    %24 = arith.select %21, %19, %23 : vector<8x64xi1>, vector<8x64xf32>
    %c0_19 = arith.constant 0 : index
    %c0_20 = arith.constant 0 : index
    %25 = vector.load %arg8[%c0_19, %c0_20] : memref<64x51xf32, #tpu.memory_space<vmem>>, vector<64x51xf32>
    %cst_21 = arith.constant dense<0.000000e+00> : vector<8x51xf32>
    %26 = tpu.matmul %24, %25, %cst_21 {dimension_numbers = #tpu.dot_dimension_numbers<[1], [0], [0], [1], [0, 0, 1, 1], [], []>} : vector<8x64xf32>, vector<64x51xf32>, vector<8x51xf32> -> vector<8x51xf32>
    %c0_22 = arith.constant 0 : index
    %c0_23 = arith.constant 0 : index
    %27 = vector.load %arg9[%c0_22, %c0_23] : memref<1x51xf32, #tpu.memory_space<vmem>>, vector<1x51xf32>
    %28 = vector.broadcast %27 : vector<1x51xf32> to vector<8x51xf32>
    %29 = arith.addf %26, %28 : vector<8x51xf32>
    %c0_24 = arith.constant 0 : index
    %c0_25 = arith.constant 0 : index
    %30 = vector.load %arg10[%c0_24, %c0_25] : memref<8x51xf32, #tpu.memory_space<vmem>>, vector<8x51xf32>
    tpu.vector_store %arg10[%c0_24, %c0_25], %29 {strides = array<i32>} : memref<8x51xf32, #tpu.memory_space<vmem>>, vector<8x51xf32>,
    return
  }
  func.func @transform_0(%arg0: i32) -> (i32, i32) {
    %c0_i32 = arith.constant 0 : i32
    %c0_i32_0 = arith.constant 0 : i32
    return %arg0, %c0_i32 : i32, i32
  }
  func.func @transform_1(%arg0: i32) -> (i32, i32) {
    %c0_i32 = arith.constant 0 : i32
    %c0_i32_0 = arith.constant 0 : i32
    return %arg0, %c0_i32 : i32, i32
  }
  func.func @transform_2(%arg0: i32) -> (i32, i32) {
    %c0_i32 = arith.constant 0 : i32
    %c0_i32_0 = arith.constant 0 : i32
    %c0_i32_1 = arith.constant 0 : i32
    return %c0_i32, %c0_i32_0 : i32, i32
  }
  func.func @transform_3(%arg0: i32) -> (i32, i32) {
    %c0_i32 = arith.constant 0 : i32
    %c0_i32_0 = arith.constant 0 : i32
    %c0_i32_1 = arith.constant 0 : i32
    return %c0_i32, %c0_i32_0 : i32, i32
  }
  func.func @transform_4(%arg0: i32) -> (i32, i32) {
    %c0_i32 = arith.constant 0 : i32
    %c0_i32_0 = arith.constant 0 : i32
    %c0_i32_1 = arith.constant 0 : i32
    return %c0_i32, %c0_i32_0 : i32, i32
  }
  func.func @transform_5(%arg0: i32) -> (i32, i32) {
    %c0_i32 = arith.constant 0 : i32
    %c0_i32_0 = arith.constant 0 : i32
    %c0_i32_1 = arith.constant 0 : i32
    return %c0_i32, %c0_i32_0 : i32, i32
  }
  func.func @transform_6(%arg0: i32) -> (i32, i32) {
    %c0_i32 = arith.constant 0 : i32
    %c0_i32_0 = arith.constant 0 : i32
    %c0_i32_1 = arith.constant 0 : i32
    return %c0_i32, %c0_i32_0 : i32, i32
  }
  func.func @transform_7(%arg0: i32) -> (i32, i32) {
    %c0_i32 = arith.constant 0 : i32
    %c0_i32_0 = arith.constant 0 : i32
    %c0_i32_1 = arith.constant 0 : i32
    return %c0_i32, %c0_i32_0 : i32, i32
  }
  func.func @transform_8(%arg0: i32) -> (i32, i32) {
    %c0_i32 = arith.constant 0 : i32
    %c0_i32_0 = arith.constant 0 : i32
    %c0_i32_1 = arith.constant 0 : i32
    return %c0_i32, %c0_i32_0 : i32, i32
  }
  func.func @transform_9(%arg0: i32) -> (i32, i32) {
    %c0_i32 = arith.constant 0 : i32
    %c0_i32_0 = arith.constant 0 : i32
    return %arg0, %c0_i32 : i32, i32
  }
}

</mosaic_0001>

<bundles_post_ra>
// kernel: tpu_custom_call.1
= control target key start
LH: loop header
LB: loop body
LE: loop exit
PB: predicated region body
PF: predicated region fallthrough
CT: control target
= control target key end

     0   :  { %v507_v1 = vmov 0.0   ;;  %vm508_vm0 = vmmov 0   ;;  %vm135_vm1 = vcmask 1043456   ;;  %vm131_vm2 = vcmask 31744   ;;  %s668_s0 = inlined_call_operand.vmem [shape: f32[8,24], index: 0, kind: input, shape index: {}]   ;;  %s669_s1 = inlined_call_operand.vmem [shape: f32[8,4], index: 1, kind: input, shape index: {}]   ;;  %s670_s2 = inlined_call_operand.vmem [shape: f32[24,64], index: 2, kind: input, shape index: {}]   ;;  %s671_s3 = inlined_call_operand.vmem [shape: f32[1,64], index: 3, kind: input, shape index: {}]   ;;  %s672_s4 = inlined_call_operand.vmem [shape: f32[64,64], index: 4, kind: input, shape index: {}]   ;;  %s673_s5 = inlined_call_operand.vmem [shape: f32[4,64], index: 5, kind: input, shape index: {}]   ;;  %s674_s6 = inlined_call_operand.vmem [shape: f32[1,64], index: 6, kind: input, shape index: {}]   ;;  %s675_s7 = inlined_call_operand.vmem [shape: f32[64,51], index: 7, kind: input, shape index: {}]   ;;  %s676_s8 = inlined_call_operand.vmem [shape: f32[1,51], index: 8, kind: input, shape index: {}]   ;;  %s677_s9 = inlined_call_operand.hbm [shape: f32[8,51], index: 9, kind: output, shape index: {}]  }
   0x1   :  { %v36_v0 = vld [vmem:[%s670_s2 + $0x10] sm:$0xff]  ;;  %430 = vmatprep.subr.mxu0 %v507_v1  ;;  %v35_v2 = vld [vmem:[%s670_s2 + $0x8] sm:$0xff]  ;;  %436 = vmatprep.mubr.msk.f32.mxu0 %vm508_vm0, %v507_v1  ;;  %v130_v3 = vld [vmem:[%s673_s5] sm:$0xf]  ;;  %vm44_vm3 = vcmask 195584  }
   0x2   :  { %431 = vmatpush3.msra.mxu0 %v36_v0  ;;  %439 = vmatprep.subr.mxu1 %v507_v1  ;;  %v129_v4 = vld [vmem:[%s669_s1] sm:$0xff]  ;;  %v128_v7 = vld [vmem:[%s672_s4 + $0x38] sm:$0xff] }
   0x3   :  { %432 = vmatprep.subr.mxu0 %v507_v1  ;;  %v34_v5 = vld [vmem:[%s670_s2] sm:$0xff]  ;;  %440 = vmatpush3.msk.msra.mxu1 %vm135_vm1, %v130_v3 }
   0x4   :  { %433 = vmatpush3.msra.mxu0 %v35_v2  ;;  %v33_v6 = vld [vmem:[%s668_s0] sm:$0xff]  ;;  %441 = vmatprep.mubr.msk.f32.mxu1 %vm508_vm0, %v507_v1 }
   0x5   :  { %14 = vsyncpa [#allocation3], 0  ;;  %434 = vmatprep.subr.mxu0 %v507_v1  ;;  %442 = vmatmul.mubr.msk.f32.vlgmr.msra.gmra.mxu1 %vm131_vm2, %v129_v4  ;;  %v127_v8 = vld [vmem:[%s672_s4 + $0x30] sm:$0xff]  ;;  %v126_v9 = vld [vmem:[%s672_s4 + $0x28] sm:$0xff]  ;;  %vm209_vm5 = vcmask 523264   ;;  %vm382_vm7 = vcmask 416768  }
   0x6   :  { %435 = vmatpush3.msra.mxu0 %v34_v5  ;;  %444 = vmatprep.subr.mxu1 %v507_v1  ;;  %v125_v10 = vld [vmem:[%s672_s4 + $0x20] sm:$0xff]  ;;  %v124_v11 = vld [vmem:[%s672_s4 + $0x18] sm:$0xff]  ;;  %v123_v12 = vld [vmem:[%s672_s4 + $0x10] sm:$0xff] }
   0x7   :  { %437 = vmatmul.mubr.msk.f32.vlgmr.msra.gmra.mxu0 %vm44_vm3, %v33_v6  ;;  %445 = vmatpush3.msra.mxu1 %v128_v7  ;;  %v122_v13 = vld [vmem:[%s672_s4 + $0x8] sm:$0xff]  ;;  %v121_v14 = vld [vmem:[%s672_s4] sm:$0xff]  ;;  %v301_v15 = vld [vmem:[%s675_s7 + $0x38] sm:$0xff] }
   0x8   :  { %446 = vmatprep.subr.mxu1 %v507_v1  ;;  %460 = vmatprep.mubr.msk.f32.mxu1 %vm508_vm0, %v507_v1  ;;  %v300_v16 = vld [vmem:[%s675_s7 + $0x30] sm:$0xff]  ;;  %v299_v17 = vld [vmem:[%s675_s7 + $0x28] sm:$0xff]  ;;  %v298_v18 = vld [vmem:[%s675_s7 + $0x20] sm:$0xff] }
   0x9   :  { %447 = vmatpush3.msra.mxu1 %v127_v8  ;;  %463 = vmatprep.subr.mxu0 %v507_v1  ;;  %v398_v19 = vld [vmem:[%s671_s3] ss:$0 sm:$0xff]  ;;  %v297_v27 = vld [vmem:[%s675_s7 + $0x18] sm:$0xff]  ;;  %v296_v28 = vld [vmem:[%s675_s7 + $0x10] sm:$0xff] }
   0xa   :  { %448 = vmatprep.subr.mxu1 %v507_v1  ;;  %479 = vmatprep.mubr.msk.f32.mxu0 %vm508_vm0, %v507_v1  ;;  %v295_v29 = vld [vmem:[%s675_s7 + $0x8] sm:$0xff]  ;;  %v294_v30 = vld [vmem:[%s675_s7] sm:$0xff]  ;;  %s509_s7 = smov [#allocation2]  }
   0xb   :  { %449 = vmatpush3.msra.mxu1 %v126_v9  ;;  %464 = vmatpush3.msra.mxu0 %v301_v15  ;;  %v403_v32 = vld [vmem:[%s674_s6] ss:$0 sm:$0xff]  ;;  %s390_s28 = sshll.u32 %s509_s7, 4  ;;  %s391_s28 = int_to_ptr.vmem [resolvable:$true] %s390_s28 }
   0xc   :  { %450 = vmatprep.subr.mxu1 %v507_v1  ;;  %465 = vmatprep.subr.mxu0 %v507_v1  ;;  %v404_v38 = vld [vmem:[%s676_s8] ss:$0 sm:$0xff]  ;;  %s485_s6 = scalar_lea.vmem %s391_s28, 128  ;;  %p490_p1 = scmp.lt.s32.totalorder %s391_s28, %s391_s28 }
   0xd   :  { %451 = vmatpush3.msra.mxu1 %v125_v10  ;;  %466 = vmatpush3.msra.mxu0 %v300_v16  ;;  %p486_p0 = scmp.ne.s32.totalorder %s391_s28, %s485_s6  ;;  %p491_p2 = scmp.lt.s32.totalorder %s485_s6, %s485_s6 }
   0xe   :  { %452 = vmatprep.subr.mxu1 %v507_v1  ;;  %467 = vmatprep.subr.mxu0 %v507_v1 }
   0xf   :  { %453 = vmatpush3.msra.mxu1 %v124_v11  ;;  %468 = vmatpush3.msra.mxu0 %v299_v17  ;;  %p492_p3 = por %p491_p2, %p490_p1 }
  0x10   :  { %454 = vmatprep.subr.mxu1 %v507_v1  ;;  %469 = vmatprep.subr.mxu0 %v507_v1 }
  0x11   :  { %455 = vmatpush3.msra.mxu1 %v123_v12  ;;  %470 = vmatpush3.msra.mxu0 %v298_v18  ;;  %p493_p4 = pnand %p492_p3, %p486_p0 }
  0x12   :  { %456 = vmatprep.subr.mxu1 %v507_v1  ;;  %471 = vmatprep.subr.mxu0 %v507_v1 }
  0x13   :  { %457 = vmatpush3.msra.mxu1 %v122_v13  ;;  %472 = vmatpush3.msra.mxu0 %v297_v27 }
  0x14   :  { %458 = vmatprep.subr.mxu1 %v507_v1  ;;  %473 = vmatprep.subr.mxu0 %v507_v1 }
  0x15   :  { %459 = vmatpush3.msra.mxu1 %v121_v14  ;;  %474 = vmatpush3.msra.mxu0 %v296_v28 }
  0x16   :  { %475 = vmatprep.subr.mxu0 %v507_v1 }
  0x17   :  { %476 = vmatpush3.msra.mxu0 %v295_v29 }
  0x18   :  { %477 = vmatprep.subr.mxu0 %v507_v1 }
  0x19   :  { %478 = vmatpush3.msra.mxu0 %v294_v30 }
  0xc5   :  { %v205_v20 = vpop.f32.mrf.mxu1 }
  0xc7   :  { %v114_v21 = vpop.f32.mrf.mxu0  ;;  %v443_v22 = vpop.f32.mrf.mxu1 }
  0xc8   :  { %v115_v23 = vadd.f32 %v398_v19, %v114_v21 }
  0xc9   :  { %v438_v24 = vpop.f32.mrf.mxu0 }
  0xca   :  { %vm118_vm4 = vcmp.ge.f32.partialorder %v115_v23, 0.0  ;;  %v119_v25 = vmul.f32 0.01, %v115_v23 }
  0xcc   :  { %v120_v26 = vsel %vm118_vm4, %v115_v23, %v119_v25 }
  0xcd   :  { %461 = vmatmul.mubr.msk.f32.vlgmr.msra.gmra.mxu1 %vm209_vm5, %v120_v26 }
 0x18d   :  { %v279_v31 = vpop.f32.mrf.mxu1 }
 0x18e   :  { %v280_v33 = vadd.f32 %v279_v31, %v205_v20 }
 0x18f   :  { %v462_v34 = vpop.f32.mrf.mxu1 }
 0x190   :  { %v290_v35 = vadd.f32 %v403_v32, %v280_v33 }
 0x192   :  { %vm291_vm6 = vcmp.ge.f32.partialorder %v290_v35, 0.0  ;;  %v292_v36 = vmul.f32 0.01, %v290_v35 }
 0x194   :  { %v293_v37 = vsel %vm291_vm6, %v290_v35, %v292_v36 }
 0x195   :  { %480 = vmatmul.mubr.msk.f32.vlgmr.msra.gmra.mxu0 %vm209_vm5, %v293_v37 }
 0x255   :  { %v378_v39 = vpop.f32.mrf.mxu0 }
 0x256   :  { %v379_v40 = vadd.f32 %v404_v38, %v378_v39 }
 0x257   :  { %v481_v41 = vpop.f32.mrf.mxu0 }
 0x258   :  { %383 = vst.msk [vmem:[#allocation2] sm:$0xff] %vm382_vm7, %v379_v40 }
 0x259   :  { %496 = shalt.err (!%p493_p4)
}
 0x25a   :  { %393 = dma.vmem_to_hbm [thread:$0]  %s391_s28, 128, %s677_s9, [#allocation3]  }
 0x25b   :  { %505 = dma.done.wait [#allocation3], 128  }
 0x25c   :  { %506 = vsyncadd [#allocation3], 4294967168 }
 0x25d   :  { %397 = vsyncpa [#allocation3], 1 }

</bundles_post_ra>
